<compile_context>
chip_gen: v7x
topology: tpu7x:2x2x1
jax: 0.10.0
libtpu: 0.0.40
codegen_flags: <defaults>
</compile_context>

<pallas_src>
import functools

import jax
import jax.numpy as jnp
import numpy as np
from jax.experimental import pallas as pl
from jax.experimental.pallas import tpu as pltpu


def bisru_kernel(xf_ref, xb_ref, w_ref, gain_ref, bias_ref,
                 outf_ref, outb_ref,
                 hcf_ref, hcb_ref,
                 *, T, B, Hh):
    """One grid step: gates for time-chunk i (fwd) and chunk n-1-i (bwd), then
    log-depth vectorized scans for both directions over the chunk's T steps."""

    # -- zero the persistent scan carries on the first grid step --
    @pl.when(pl.program_id(0) == 0)
    def _():
        hcf_ref[...] = jnp.zeros_like(hcf_ref)
        hcb_ref[...] = jnp.zeros_like(hcb_ref)

    xf = xf_ref[...]                       # (T*B, D) f32, time chunk i
    xb = xb_ref[...]                       # (T*B, D) f32, time chunk n-1-i

    # ---------- fused pre-activation: one MXU launch for both directions ----
    x_cat = jnp.concatenate(
        [xf.astype(jnp.bfloat16), xb.astype(jnp.bfloat16)], axis=0)   # (2*T*B, D)
    pre = jnp.dot(x_cat, w_ref[...],
                  preferred_element_type=jnp.float32)                 # (2*T*B, 6*Hh)
    # LayerNorm via two independent moments (E[x], E[x^2]).
    m1 = jnp.mean(pre, axis=-1, keepdims=True)
    m2 = jnp.mean(pre * pre, axis=-1, keepdims=True)
    pre = (pre - m1) * jax.lax.rsqrt(m2 - m1 * m1 + 1e-5)
    pre = pre * gain_ref[...] + bias_ref[...]

    TB = T * B
    nf = pre[:TB]                          # forward-direction rows
    nb = pre[TB:]                          # backward-direction rows

    # Gate slices (W columns permuted in the wrapper to [gf|xf|hgf|gb|xb|hgb]).
    gf = jax.nn.sigmoid(nf[:, 0 * Hh:1 * Hh])
    af = 1.0 - gf                          # recurrence multiplier
    bf = gf * nf[:, 1 * Hh:2 * Hh]         # recurrence additive term
    hgf = jax.nn.sigmoid(nf[:, 2 * Hh:3 * Hh])

    gb = jax.nn.sigmoid(nb[:, 3 * Hh:4 * Hh])
    ab = 1.0 - gb
    bb = gb * nb[:, 4 * Hh:5 * Hh]
    hgb = jax.nn.sigmoid(nb[:, 5 * Hh:6 * Hh])

    # ---------- fold the cross-chunk carry into the boundary step ----------
    hcf = hcf_ref[...]                     # (B, Hh) carry entering this chunk
    hcb = hcb_ref[...]
    if T == 1:
        bf = bf + af * hcf
        bb = bb + ab * hcb
    else:
        bf = jnp.concatenate([bf[:B] + af[:B] * hcf, bf[B:]], axis=0)
        bb = jnp.concatenate([bb[:-B], bb[-B:] + ab[-B:] * hcb], axis=0)

    # ---------- log-depth (Hillis-Steele) linear-recurrence scans ----------
    # Rows are ordered t*B + batch, so a time shift of d is a row shift of d*B.
    # fwd: h_t = a_t*h_{t-1}+b_t ; bwd: h_t = a_t*h_{t+1}+b_t (shift direction
    # reversed, padding at the other end).
    def lin_scan(a, b, reverse):
        d = 1
        while d < T:
            sh = d * B
            pad0 = jnp.zeros((sh, Hh), jnp.float32)
            if reverse:
                b_sh = jnp.concatenate([b[sh:], pad0], axis=0)
            else:
                b_sh = jnp.concatenate([pad0, b[:-sh]], axis=0)
            b = a * b_sh + b
            if 2 * d < T:                  # 'a' not needed after the last pass
                pad1 = jnp.ones((sh, Hh), jnp.float32)
                if reverse:
                    a_sh = jnp.concatenate([a[sh:], pad1], axis=0)
                else:
                    a_sh = jnp.concatenate([pad1, a[:-sh]], axis=0)
                a = a * a_sh
            d *= 2
        return b

    hf = lin_scan(af, bf, reverse=False)   # (T*B, Hh) forward hidden states
    hb = lin_scan(ab, bb, reverse=True)    # (T*B, Hh) backward hidden states

    # Carries for the next grid step.
    hcf_ref[...] = hf[-B:]                 # forward: value at local time T-1
    hcb_ref[...] = hb[:B]                  # backward: value at local time 0

    # ---------- highway / output gate: single vectorized pass, single store --
    outf_ref[...] = (1.0 - hgf) * hf + xf[:, :Hh] * hgf
    outb_ref[...] = (1.0 - hgb) * hb + xb[:, Hh:2 * Hh] * hgb


def _choose_tile_t(L, B, target_rows=512):
    """Largest TILE_T dividing L with TILE_T*B a multiple of 8 (BlockSpec
    sublane rule) and at most target_rows rows; fall back to whole sequence."""
    cands = [t for t in range(1, L + 1)
             if L % t == 0 and (t * B) % 8 == 0 and t * B <= target_rows]
    return max(cands) if cands else L


def bisru_forward(x, w_in, ln_gain, ln_bias, *, tile_t=None, concat=True):
    """x: (L, B, D) float32 (time-major, as the PyTorch module expects);
    w_in: (D, 3H) = input_linear.weight.T; ln_gain/ln_bias: (1, 3H).
    If concat=False, returns (out_fwd_half, out_bwd_half) each (L, B, H//2)
    so the consumer can fuse the concat and skip an extra HBM pass."""
    L, B, D = x.shape
    H = w_in.shape[1] // 3
    assert D == H, "BiSRU output gate requires input_size == output_size"
    assert H % 2 == 0
    Hh = H // 2

    if tile_t is None:
        tile_t = _choose_tile_t(L, B)
    assert L % tile_t == 0, "tile_t must divide the sequence length"
    tb = tile_t * B
    assert tb % 8 == 0 or tb == L * B, "tile rows must be 8-aligned"
    n_chunks = L // tile_t

    # Reorder the 3H pre-activation columns [gf|gb | xf|xb | hgf|hgb]
    # -> [gf|xf|hgf | gb|xb|hgb] so each direction uses a contiguous slab.
    # LayerNorm stats are permutation invariant, so this is layout plumbing.
    perm = np.concatenate([
        np.arange(0, Hh), np.arange(H, H + Hh), np.arange(2 * H, 2 * H + Hh),
        np.arange(Hh, H), np.arange(H + Hh, 2 * H), np.arange(2 * H + Hh, 3 * H),
    ])
    w_r = jnp.asarray(w_in)[:, perm].astype(jnp.bfloat16)      # bf16 MXU feed
    gain_r = jnp.asarray(ln_gain)[:, perm].astype(jnp.float32)
    bias_r = jnp.asarray(ln_bias)[:, perm].astype(jnp.float32)

    x2d = x.reshape(L * B, D)
    kernel = functools.partial(bisru_kernel, T=tile_t, B=B, Hh=Hh)

    out_f, out_b = pl.pallas_call(
        kernel,
        out_shape=(jax.ShapeDtypeStruct((L * B, Hh), jnp.float32),
                   jax.ShapeDtypeStruct((L * B, Hh), jnp.float32)),
        grid_spec=pltpu.PrefetchScalarGridSpec(
            num_scalar_prefetch=0,
            grid=(n_chunks,),
            in_specs=[
                pl.BlockSpec((tb, D), lambda i: (i, 0)),                  # x, fwd chunk
                pl.BlockSpec((tb, D), lambda i: (n_chunks - 1 - i, 0)),   # x, bwd chunk
                pl.BlockSpec((D, 3 * H), lambda i: (0, 0)),               # W (bf16, resident)
                pl.BlockSpec((1, 3 * H), lambda i: (0, 0)),               # LN gain
                pl.BlockSpec((1, 3 * H), lambda i: (0, 0)),               # LN bias
            ],
            out_specs=[
                pl.BlockSpec((tb, Hh), lambda i: (i, 0)),                 # fwd half
                pl.BlockSpec((tb, Hh), lambda i: (n_chunks - 1 - i, 0)),  # bwd half
            ],
            scratch_shapes=[
                pltpu.VMEM((B, Hh), jnp.float32),    # forward scan carry
                pltpu.VMEM((B, Hh), jnp.float32),    # backward scan carry
            ]),
        compiler_params=pltpu.CompilerParams(
            dimension_semantics=("arbitrary",),
            vmem_limit_bytes=48 * 1024 * 1024),
    )(x2d, x2d, w_r, gain_r, bias_r)

    out_f = out_f.reshape(L, B, Hh)
    out_b = out_b.reshape(L, B, Hh)
    if concat:
        return jnp.concatenate([out_f, out_b], axis=-1)       # (L, B, H)
    return out_f, out_b


def bisru_reference(x, w_in, ln_gain, ln_bias):
    """Pure-JAX f32 reference mirroring the PyTorch forward (dropout = identity)."""
    L, B, D = x.shape
    H = w_in.shape[1] // 3
    pre = jnp.einsum("lbd,dh->lbh", x, w_in)
    mean = jnp.mean(pre, axis=-1, keepdims=True)
    var = jnp.mean((pre - mean) ** 2, axis=-1, keepdims=True)
    pre = (pre - mean) * jax.lax.rsqrt(var + 1e-5) * ln_gain[0] + ln_bias[0]

    hgate = jax.nn.sigmoid(pre[:, :, 2 * H:])
    g = jax.nn.sigmoid(pre[:, :, :H])
    xg = pre[:, :, H:2 * H]
    Hh = H // 2
    gf, gb = g[..., :Hh], g[..., Hh:]
    x_f, x_b = xg[..., :Hh], xg[..., Hh:]
    hf_pre, hb_pre = gf * x_f, gb * x_b

    h_i_f = jnp.zeros((B, Hh), jnp.float32)
    h_i_b = jnp.zeros((B, Hh), jnp.float32)
    h_f, h_b = [], []
    for i in range(L):
        h_i_f = (1.0 - gf[i]) * h_i_f + hf_pre[i]
        h_i_b = (1.0 - gb[L - 1 - i]) * h_i_b + hb_pre[L - 1 - i]
        h_f.append(h_i_f)
        h_b.append(h_i_b)
    h = jnp.concatenate([jnp.stack(h_f), jnp.stack(h_b[::-1])], axis=-1)
    return (1.0 - hgate) * h + x * hgate


if __name__ == "__main__":
    # Small shapes implied by the module: time-major (seq=8, batch=2, hidden=32),
    # input_size == output_size == 32 (required by the output-gate residual).
    L, B, H = 8, 2, 32
    D = H

    key = jax.random.PRNGKey(0)
    kx, kw, kg = jax.random.split(key, 3)

    x = jax.random.normal(kx, (L, B, D), dtype=jnp.float32)
    # nn.Linear(input_size, 3*output_size, bias=False): weight (3H, D); pass W^T.
    w_pt = jax.random.normal(kw, (3 * H, D), dtype=jnp.float32) * (1.0 / jnp.sqrt(D))
    w_in = w_pt.T                                            # (D, 3H)
    ln_gain = jnp.ones((1, 3 * H), jnp.float32) + 0.01 * jax.random.normal(
        kg, (1, 3 * H), dtype=jnp.float32)
    ln_bias = jnp.zeros((1, 3 * H), jnp.float32)

    # tile_t=4 -> 2 time-chunks: exercises the carried scan state across grid steps.
    out = bisru_forward(x, w_in, ln_gain, ln_bias, tile_t=4)
    out = jax.block_until_ready(out)

    ref = bisru_reference(x, w_in, ln_gain, ln_bias)
    assert out.shape == (L, B, H)
    err = float(jnp.max(jnp.abs(out - ref)))
    # Tolerance re-baselined for the bf16 MXU feed (f32 accumulation).
    assert jnp.allclose(out, ref, atol=5e-2, rtol=5e-2), err

    print("KERNEL_OK")
</pallas_src>

<mosaic_0001>
module attributes {stable_mosaic.version = 11 : i64} {
  func.func @bisru_kernel(%arg0: i32, %arg1: memref<8x32xf32, #tpu.memory_space<vmem>>, %arg2: memref<8x32xf32, #tpu.memory_space<vmem>>, %arg3: memref<32x96xbf16, #tpu.memory_space<vmem>>, %arg4: memref<1x96xf32, #tpu.memory_space<vmem>>, %arg5: memref<1x96xf32, #tpu.memory_space<vmem>>, %arg6: memref<8x16xf32, #tpu.memory_space<vmem>>, %arg7: memref<8x16xf32, #tpu.memory_space<vmem>>, %arg8: memref<2x16xf32, #tpu.memory_space<vmem>>, %arg9: memref<2x16xf32, #tpu.memory_space<vmem>>) attributes {dimension_semantics = [#tpu.dimension_semantics<arbitrary>], iteration_bounds = array<i64: 2>, scalar_prefetch = 0 : i64, scratch_operands = 2 : i64, tpu.core_type = #tpu.core_type<tc>, window_params = [{transform_indices = @transform_0, window_bounds = array<i64: 8, 32>}, {transform_indices = @transform_1, window_bounds = array<i64: 8, 32>}, {pipeline_mode = #tpu.pipeline_mode<synchronous>, transform_indices = @transform_2, window_bounds = array<i64: 32, 96>}, {pipeline_mode = #tpu.pipeline_mode<synchronous>, transform_indices = @transform_3, window_bounds = array<i64: 1, 96>}, {pipeline_mode = #tpu.pipeline_mode<synchronous>, transform_indices = @transform_4, window_bounds = array<i64: 1, 96>}, {transform_indices = @transform_5, window_bounds = array<i64: 8, 16>}, {transform_indices = @transform_6, window_bounds = array<i64: 8, 16>}]} {
    %c0_i32 = arith.constant 0 : i32
    %0 = arith.cmpi eq, %arg0, %c0_i32 : i32
    %1 = arith.extui %0 : i1 to i32
    %c0_i32_0 = arith.constant 0 : i32
    %2 = arith.cmpi ne, %1, %c0_i32_0 : i32
    scf.if %2 {
      %cst_41 = arith.constant 0.000000e+00 : f32
      %128 = vector.broadcast %cst_41 : f32 to vector<2x16xf32>
      %c0_42 = arith.constant 0 : index
      %c0_43 = arith.constant 0 : index
      %129 = vector.load %arg8[%c0_42, %c0_43] : memref<2x16xf32, #tpu.memory_space<vmem>>, vector<2x16xf32>
      tpu.vector_store %arg8[%c0_42, %c0_43], %128 {strides = array<i32>} : memref<2x16xf32, #tpu.memory_space<vmem>>, vector<2x16xf32>,
      %cst_44 = arith.constant 0.000000e+00 : f32
      %130 = vector.broadcast %cst_44 : f32 to vector<2x16xf32>
      %c0_45 = arith.constant 0 : index
      %c0_46 = arith.constant 0 : index
      %131 = vector.load %arg9[%c0_45, %c0_46] : memref<2x16xf32, #tpu.memory_space<vmem>>, vector<2x16xf32>
      tpu.vector_store %arg9[%c0_45, %c0_46], %130 {strides = array<i32>} : memref<2x16xf32, #tpu.memory_space<vmem>>, vector<2x16xf32>,
    } else {
    }
    %c0 = arith.constant 0 : index
    %c0_1 = arith.constant 0 : index
    %3 = vector.load %arg1[%c0, %c0_1] : memref<8x32xf32, #tpu.memory_space<vmem>>, vector<8x32xf32>
    %c0_2 = arith.constant 0 : index
    %c0_3 = arith.constant 0 : index
    %4 = vector.load %arg2[%c0_2, %c0_3] : memref<8x32xf32, #tpu.memory_space<vmem>>, vector<8x32xf32>
    %5 = arith.truncf %3 : vector<8x32xf32> to vector<8x32xbf16>
    %6 = arith.truncf %4 : vector<8x32xf32> to vector<8x32xbf16>
    %7 = tpu.concatenate %5, %6 in 0 : vector<8x32xbf16>, vector<8x32xbf16> -> vector<16x32xbf16>
    %c0_4 = arith.constant 0 : index
    %c0_5 = arith.constant 0 : index
    %8 = vector.load %arg3[%c0_4, %c0_5] : memref<32x96xbf16, #tpu.memory_space<vmem>>, vector<32x96xbf16>
    %cst = arith.constant dense<0.000000e+00> : vector<16x96xf32>
    %9 = tpu.matmul %7, %8, %cst {dimension_numbers = #tpu.dot_dimension_numbers<[1], [0], [0], [1], [0, 0, 1, 1], [], []>} : vector<16x32xbf16>, vector<32x96xbf16>, vector<16x96xf32> -> vector<16x96xf32>
    %cst_6 = arith.constant dense<0.000000e+00> : vector<16xf32>
    %10 = vector.multi_reduction <add>, %9, %cst_6 [1] : vector<16x96xf32> to vector<16xf32>
    %11 = vector.shape_cast %10 : vector<16xf32> to vector<16x1xf32>
    %cst_7 = arith.constant 9.600000e+01 : f32
    %12 = vector.broadcast %cst_7 : f32 to vector<16x1xf32>
    %13 = arith.divf %11, %12 : vector<16x1xf32>
    %14 = arith.mulf %9, %9 : vector<16x96xf32>
    %cst_8 = arith.constant dense<0.000000e+00> : vector<16xf32>
    %15 = vector.multi_reduction <add>, %14, %cst_8 [1] : vector<16x96xf32> to vector<16xf32>
    %16 = vector.shape_cast %15 : vector<16xf32> to vector<16x1xf32>
    %cst_9 = arith.constant 9.600000e+01 : f32
    %17 = vector.broadcast %cst_9 : f32 to vector<16x1xf32>
    %18 = arith.divf %16, %17 : vector<16x1xf32>
    %19 = vector.broadcast %13 : vector<16x1xf32> to vector<16x96xf32>
    %20 = arith.subf %9, %19 : vector<16x96xf32>
    %21 = arith.mulf %13, %13 : vector<16x1xf32>
    %22 = arith.subf %18, %21 : vector<16x1xf32>
    %cst_10 = arith.constant 9.99999974E-6 : f32
    %23 = vector.broadcast %cst_10 : f32 to vector<16x1xf32>
    %24 = arith.addf %22, %23 : vector<16x1xf32>
    %25 = math.rsqrt %24 : vector<16x1xf32>
    %26 = vector.broadcast %25 : vector<16x1xf32> to vector<16x96xf32>
    %27 = arith.mulf %20, %26 : vector<16x96xf32>
    %c0_11 = arith.constant 0 : index
    %c0_12 = arith.constant 0 : index
    %28 = vector.load %arg4[%c0_11, %c0_12] : memref<1x96xf32, #tpu.memory_space<vmem>>, vector<1x96xf32>
    %29 = vector.broadcast %28 : vector<1x96xf32> to vector<16x96xf32>
    %30 = arith.mulf %27, %29 : vector<16x96xf32>
    %c0_13 = arith.constant 0 : index
    %c0_14 = arith.constant 0 : index
    %31 = vector.load %arg5[%c0_13, %c0_14] : memref<1x96xf32, #tpu.memory_space<vmem>>, vector<1x96xf32>
    %32 = vector.broadcast %31 : vector<1x96xf32> to vector<16x96xf32>
    %33 = arith.addf %30, %32 : vector<16x96xf32>
    %34 = vector.extract_strided_slice %33 {offsets = [0, 0], sizes = [8, 96], strides = [1, 1]} : vector<16x96xf32> to vector<8x96xf32>
    %35 = vector.extract_strided_slice %33 {offsets = [8, 0], sizes = [8, 96], strides = [1, 1]} : vector<16x96xf32> to vector<8x96xf32>
    %36 = vector.extract_strided_slice %34 {offsets = [0, 0], sizes = [8, 16], strides = [1, 1]} : vector<8x96xf32> to vector<8x16xf32>
    %37 = arith.negf %36 : vector<8x16xf32>
    %38 = math.exp %37 : vector<8x16xf32>
    %cst_15 = arith.constant 1.000000e+00 : f32
    %39 = vector.broadcast %cst_15 : f32 to vector<8x16xf32>
    %40 = arith.addf %39, %38 : vector<8x16xf32>
    %41 = arith.divf %39, %40 : vector<8x16xf32>
    %cst_16 = arith.constant 1.000000e+00 : f32
    %42 = vector.broadcast %cst_16 : f32 to vector<8x16xf32>
    %43 = arith.subf %42, %41 : vector<8x16xf32>
    %44 = vector.extract_strided_slice %34 {offsets = [0, 16], sizes = [8, 16], strides = [1, 1]} : vector<8x96xf32> to vector<8x16xf32>
    %45 = arith.mulf %41, %44 : vector<8x16xf32>
    %46 = vector.extract_strided_slice %34 {offsets = [0, 32], sizes = [8, 16], strides = [1, 1]} : vector<8x96xf32> to vector<8x16xf32>
    %47 = arith.negf %46 : vector<8x16xf32>
    %48 = math.exp %47 : vector<8x16xf32>
    %cst_17 = arith.constant 1.000000e+00 : f32
    %49 = vector.broadcast %cst_17 : f32 to vector<8x16xf32>
    %50 = arith.addf %49, %48 : vector<8x16xf32>
    %51 = arith.divf %49, %50 : vector<8x16xf32>
    %52 = vector.extract_strided_slice %35 {offsets = [0, 48], sizes = [8, 16], strides = [1, 1]} : vector<8x96xf32> to vector<8x16xf32>
    %53 = arith.negf %52 : vector<8x16xf32>
    %54 = math.exp %53 : vector<8x16xf32>
    %cst_18 = arith.constant 1.000000e+00 : f32
    %55 = vector.broadcast %cst_18 : f32 to vector<8x16xf32>
    %56 = arith.addf %55, %54 : vector<8x16xf32>
    %57 = arith.divf %55, %56 : vector<8x16xf32>
    %cst_19 = arith.constant 1.000000e+00 : f32
    %58 = vector.broadcast %cst_19 : f32 to vector<8x16xf32>
    %59 = arith.subf %58, %57 : vector<8x16xf32>
    %60 = vector.extract_strided_slice %35 {offsets = [0, 64], sizes = [8, 16], strides = [1, 1]} : vector<8x96xf32> to vector<8x16xf32>
    %61 = arith.mulf %57, %60 : vector<8x16xf32>
    %62 = vector.extract_strided_slice %35 {offsets = [0, 80], sizes = [8, 16], strides = [1, 1]} : vector<8x96xf32> to vector<8x16xf32>
    %63 = arith.negf %62 : vector<8x16xf32>
    %64 = math.exp %63 : vector<8x16xf32>
    %cst_20 = arith.constant 1.000000e+00 : f32
    %65 = vector.broadcast %cst_20 : f32 to vector<8x16xf32>
    %66 = arith.addf %65, %64 : vector<8x16xf32>
    %67 = arith.divf %65, %66 : vector<8x16xf32>
    %c0_21 = arith.constant 0 : index
    %c0_22 = arith.constant 0 : index
    %68 = vector.load %arg8[%c0_21, %c0_22] : memref<2x16xf32, #tpu.memory_space<vmem>>, vector<2x16xf32>
    %c0_23 = arith.constant 0 : index
    %c0_24 = arith.constant 0 : index
    %69 = vector.load %arg9[%c0_23, %c0_24] : memref<2x16xf32, #tpu.memory_space<vmem>>, vector<2x16xf32>
    %70 = vector.extract_strided_slice %45 {offsets = [0, 0], sizes = [2, 16], strides = [1, 1]} : vector<8x16xf32> to vector<2x16xf32>
    %71 = vector.extract_strided_slice %43 {offsets = [0, 0], sizes = [2, 16], strides = [1, 1]} : vector<8x16xf32> to vector<2x16xf32>
    %72 = arith.mulf %71, %68 : vector<2x16xf32>
    %73 = arith.addf %70, %72 : vector<2x16xf32>
    %74 = vector.extract_strided_slice %45 {offsets = [2, 0], sizes = [6, 16], strides = [1, 1]} : vector<8x16xf32> to vector<6x16xf32>
    %75 = tpu.concatenate %73, %74 in 0 : vector<2x16xf32>, vector<6x16xf32> -> vector<8x16xf32>
    %76 = vector.extract_strided_slice %61 {offsets = [0, 0], sizes = [6, 16], strides = [1, 1]} : vector<8x16xf32> to vector<6x16xf32>
    %77 = vector.extract_strided_slice %61 {offsets = [6, 0], sizes = [2, 16], strides = [1, 1]} : vector<8x16xf32> to vector<2x16xf32>
    %78 = vector.extract_strided_slice %59 {offsets = [6, 0], sizes = [2, 16], strides = [1, 1]} : vector<8x16xf32> to vector<2x16xf32>
    %79 = arith.mulf %78, %69 : vector<2x16xf32>
    %80 = arith.addf %77, %79 : vector<2x16xf32>
    %81 = tpu.concatenate %76, %80 in 0 : vector<6x16xf32>, vector<2x16xf32> -> vector<8x16xf32>
    %cst_25 = arith.constant 0.000000e+00 : f32
    %82 = vector.broadcast %cst_25 : f32 to vector<2x16xf32>
    %83 = vector.extract_strided_slice %75 {offsets = [0, 0], sizes = [6, 16], strides = [1, 1]} : vector<8x16xf32> to vector<6x16xf32>
    %84 = tpu.concatenate %82, %83 in 0 : vector<2x16xf32>, vector<6x16xf32> -> vector<8x16xf32>
    %85 = arith.mulf %43, %84 : vector<8x16xf32>
    %86 = arith.addf %85, %75 : vector<8x16xf32>
    %cst_26 = arith.constant 1.000000e+00 : f32
    %87 = vector.broadcast %cst_26 : f32 to vector<2x16xf32>
    %88 = vector.extract_strided_slice %43 {offsets = [0, 0], sizes = [6, 16], strides = [1, 1]} : vector<8x16xf32> to vector<6x16xf32>
    %89 = tpu.concatenate %87, %88 in 0 : vector<2x16xf32>, vector<6x16xf32> -> vector<8x16xf32>
    %90 = arith.mulf %43, %89 : vector<8x16xf32>
    %cst_27 = arith.constant 0.000000e+00 : f32
    %91 = vector.broadcast %cst_27 : f32 to vector<4x16xf32>
    %92 = vector.extract_strided_slice %86 {offsets = [0, 0], sizes = [4, 16], strides = [1, 1]} : vector<8x16xf32> to vector<4x16xf32>
    %93 = tpu.concatenate %91, %92 in 0 : vector<4x16xf32>, vector<4x16xf32> -> vector<8x16xf32>
    %94 = arith.mulf %90, %93 : vector<8x16xf32>
    %95 = arith.addf %94, %86 : vector<8x16xf32>
    %cst_28 = arith.constant 0.000000e+00 : f32
    %96 = vector.broadcast %cst_28 : f32 to vector<2x16xf32>
    %97 = vector.extract_strided_slice %81 {offsets = [2, 0], sizes = [6, 16], strides = [1, 1]} : vector<8x16xf32> to vector<6x16xf32>
    %98 = tpu.concatenate %97, %96 in 0 : vector<6x16xf32>, vector<2x16xf32> -> vector<8x16xf32>
    %99 = arith.mulf %59, %98 : vector<8x16xf32>
    %100 = arith.addf %99, %81 : vector<8x16xf32>
    %cst_29 = arith.constant 1.000000e+00 : f32
    %101 = vector.broadcast %cst_29 : f32 to vector<2x16xf32>
    %102 = vector.extract_strided_slice %59 {offsets = [2, 0], sizes = [6, 16], strides = [1, 1]} : vector<8x16xf32> to vector<6x16xf32>
    %103 = tpu.concatenate %102, %101 in 0 : vector<6x16xf32>, vector<2x16xf32> -> vector<8x16xf32>
    %104 = arith.mulf %59, %103 : vector<8x16xf32>
    %cst_30 = arith.constant 0.000000e+00 : f32
    %105 = vector.broadcast %cst_30 : f32 to vector<4x16xf32>
    %106 = vector.extract_strided_slice %100 {offsets = [4, 0], sizes = [4, 16], strides = [1, 1]} : vector<8x16xf32> to vector<4x16xf32>
    %107 = tpu.concatenate %106, %105 in 0 : vector<4x16xf32>, vector<4x16xf32> -> vector<8x16xf32>
    %108 = arith.mulf %104, %107 : vector<8x16xf32>
    %109 = arith.addf %108, %100 : vector<8x16xf32>
    %110 = vector.extract_strided_slice %95 {offsets = [6, 0], sizes = [2, 16], strides = [1, 1]} : vector<8x16xf32> to vector<2x16xf32>
    %c0_31 = arith.constant 0 : index
    %c0_32 = arith.constant 0 : index
    %111 = vector.load %arg8[%c0_31, %c0_32] : memref<2x16xf32, #tpu.memory_space<vmem>>, vector<2x16xf32>
    tpu.vector_store %arg8[%c0_31, %c0_32], %110 {strides = array<i32>} : memref<2x16xf32, #tpu.memory_space<vmem>>, vector<2x16xf32>,
    %112 = vector.extract_strided_slice %109 {offsets = [0, 0], sizes = [2, 16], strides = [1, 1]} : vector<8x16xf32> to vector<2x16xf32>
    %c0_33 = arith.constant 0 : index
    %c0_34 = arith.constant 0 : index
    %113 = vector.load %arg9[%c0_33, %c0_34] : memref<2x16xf32, #tpu.memory_space<vmem>>, vector<2x16xf32>
    tpu.vector_store %arg9[%c0_33, %c0_34], %112 {strides = array<i32>} : memref<2x16xf32, #tpu.memory_space<vmem>>, vector<2x16xf32>,
    %cst_35 = arith.constant 1.000000e+00 : f32
    %114 = vector.broadcast %cst_35 : f32 to vector<8x16xf32>
    %115 = arith.subf %114, %51 : vector<8x16xf32>
    %116 = arith.mulf %115, %95 : vector<8x16xf32>
    %117 = vector.extract_strided_slice %3 {offsets = [0, 0], sizes = [8, 16], strides = [1, 1]} : vector<8x32xf32> to vector<8x16xf32>
    %118 = arith.mulf %117, %51 : vector<8x16xf32>
    %119 = arith.addf %116, %118 : vector<8x16xf32>
    %c0_36 = arith.constant 0 : index
    %c0_37 = arith.constant 0 : index
    %120 = vector.load %arg6[%c0_36, %c0_37] : memref<8x16xf32, #tpu.memory_space<vmem>>, vector<8x16xf32>
    tpu.vector_store %arg6[%c0_36, %c0_37], %119 {strides = array<i32>} : memref<8x16xf32, #tpu.memory_space<vmem>>, vector<8x16xf32>,
    %cst_38 = arith.constant 1.000000e+00 : f32
    %121 = vector.broadcast %cst_38 : f32 to vector<8x16xf32>
    %122 = arith.subf %121, %67 : vector<8x16xf32>
    %123 = arith.mulf %122, %109 : vector<8x16xf32>
    %124 = vector.extract_strided_slice %4 {offsets = [0, 16], sizes = [8, 16], strides = [1, 1]} : vector<8x32xf32> to vector<8x16xf32>
    %125 = arith.mulf %124, %67 : vector<8x16xf32>
    %126 = arith.addf %123, %125 : vector<8x16xf32>
    %c0_39 = arith.constant 0 : index
    %c0_40 = arith.constant 0 : index
    %127 = vector.load %arg7[%c0_39, %c0_40] : memref<8x16xf32, #tpu.memory_space<vmem>>, vector<8x16xf32>
    tpu.vector_store %arg7[%c0_39, %c0_40], %126 {strides = array<i32>} : memref<8x16xf32, #tpu.memory_space<vmem>>, vector<8x16xf32>,
    return
  }
  func.func @transform_0(%arg0: i32) -> (i32, i32) {
    %c0_i32 = arith.constant 0 : i32
    %c0_i32_0 = arith.constant 0 : i32
    return %arg0, %c0_i32 : i32, i32
  }
  func.func @transform_1(%arg0: i32) -> (i32, i32) {
    %c1_i32 = arith.constant 1 : i32
    %0 = arith.subi %c1_i32, %arg0 : i32
    %c0_i32 = arith.constant 0 : i32
    %c0_i32_0 = arith.constant 0 : i32
    return %0, %c0_i32 : i32, i32
  }
  func.func @transform_2(%arg0: i32) -> (i32, i32) {
    %c0_i32 = arith.constant 0 : i32
    %c0_i32_0 = arith.constant 0 : i32
    %c0_i32_1 = arith.constant 0 : i32
    return %c0_i32, %c0_i32_0 : i32, i32
  }
  func.func @transform_3(%arg0: i32) -> (i32, i32) {
    %c0_i32 = arith.constant 0 : i32
    %c0_i32_0 = arith.constant 0 : i32
    %c0_i32_1 = arith.constant 0 : i32
    return %c0_i32, %c0_i32_0 : i32, i32
  }
  func.func @transform_4(%arg0: i32) -> (i32, i32) {
    %c0_i32 = arith.constant 0 : i32
    %c0_i32_0 = arith.constant 0 : i32
    %c0_i32_1 = arith.constant 0 : i32
    return %c0_i32, %c0_i32_0 : i32, i32
  }
  func.func @transform_5(%arg0: i32) -> (i32, i32) {
    %c0_i32 = arith.constant 0 : i32
    %c0_i32_0 = arith.constant 0 : i32
    return %arg0, %c0_i32 : i32, i32
  }
  func.func @transform_6(%arg0: i32) -> (i32, i32) {
    %c1_i32 = arith.constant 1 : i32
    %0 = arith.subi %c1_i32, %arg0 : i32
    %c0_i32 = arith.constant 0 : i32
    %c0_i32_0 = arith.constant 0 : i32
    return %0, %c0_i32 : i32, i32
  }
}

</mosaic_0001>

<bundles_post_ra>
// kernel: tpu_custom_call.1
= control target key start
LH: loop header
LB: loop body
LE: loop exit
PB: predicated region body
PF: predicated region fallthrough
CT: control target
= control target key end

     0   :  { %s1566_s0 = inlined_call_operand.hbm [shape: f32[16,32], index: 0, kind: input, shape index: {}]   ;;  %s1567_s1 = inlined_call_operand.hbm [shape: f32[16,32], index: 1, kind: input, shape index: {}]   ;;  %s1568_s2 = inlined_call_operand.hbm [shape: bf16[32,96], index: 2, kind: input, shape index: {}]   ;;  %s1569_s3 = inlined_call_operand.vmem [shape: f32[1,96], index: 3, kind: input, shape index: {}]   ;;  %s1570_s4 = inlined_call_operand.vmem [shape: f32[1,96], index: 4, kind: input, shape index: {}]   ;;  %s1571_s5 = inlined_call_operand.hbm [shape: f32[16,16], index: 5, kind: output, shape index: {0}]   ;;  %s1572_s6 = inlined_call_operand.hbm [shape: f32[16,16], index: 6, kind: output, shape index: {1}]  }
   0x1   :  { %1583 = sst [smem:[#allocation21_spill]] %s1566_s0 }
   0x2   :  { %1584 = sst [smem:[#allocation22_spill]] %s1568_s2 }
   0x3   :  { %12 = vsyncpa [#allocation5], 0 }
   0x4   :  { %14 = vsyncpa [#allocation5 + $0x1], 0 }
   0x5   :  { %15 = vsyncpa [#allocation8], 0 }
   0x6   :  { %17 = vsyncpa [#allocation8 + $0x1], 0 }
   0x7   :  { %18 = vsyncpa [#allocation6], 0 }
   0x8   :  { %20 = vsyncpa [#allocation6 + $0x1], 0 }
   0x9   :  { %21 = vsyncpa [#allocation12], 0 }
   0xa   :  { %23 = vsyncpa [#allocation12 + $0x1], 0  ;;  %s1178_s21 = smov 0   ;;  %s1180_s22 = smov 0  }
   0xb   :  { %s1182_s23 = smov 0   ;;  %s1184_s24 = smov 0  }
   0xc   :  { %s1186_s25 = smov 0   ;;  %s1188_s26 = smov 0  }
   0xd   :  { %s1190_s27 = smov 0  }
   0xe LB: > { %1585 = sst [smem:[#allocation18_spill]] %s1121_s26  ;;  %s1127_s28 = smov [#allocation9]   ;;  %s1125_s27 = sphi %s1190_s27, %s1627_s27   ;;  %s1121_s26 = sphi %s1188_s26, %s1621_s26   ;;  %s1117_s25 = sphi %s1186_s25, %s1626_s25   ;;  %s1113_s24 = sphi %s1184_s24, %s1625_s24   ;;  %s1109_s23 = sphi %s1182_s23, %s1624_s23   ;;  %s1105_s22 = sphi %s1180_s22, %s1623_s22   ;;  %s1101_s21 = sphi %s1178_s21, %s1622_s21  }
   0xf   : > { %s217_s29 = sshll.u32 %s1127_s28, 4  ;;  %s1214_s30 = sadd.s32 4294967295, %s1125_s27   ;;  %s218_s29 = int_to_ptr.vmem [resolvable:$true] %s217_s29 }
  0x10   : > { %p753_p0 = scmp.ge.s32.totalorder %s1125_s27, 1  ;;  %p1573_p1 = scmp.eq.s32.totalorder %s1214_s30, 0 }
  0x11   : > { %p205_p2 = scmp.lt.s32.totalorder %s1125_s27, 3  ;;  %s752_s9 = sadd.s32 4294967294, %s1125_s27  }
  0x12   : > { %s1588_s2 = sld [smem:[#allocation22_spill]] }
  0x13   : > { %p1220_p4 = pnand %p753_p0, %p205_p2 }
  0x15   : > { %s1586_s7 = scalar_select %p1220_p4, 1, 0 }
  0x16   : > { %p803_p6 = pneg %p1220_p4 }
  0x18   : > { %p1229_p7 = pnand %p803_p6, %p1573_p1  ;;  %s907_s12 = scalar_lea.hbm %s1588_s2, 256 }
  0x19   : > { %p908_p8 = scmp.ne.s32.totalorder %s1588_s2, %s907_s12  ;;  %p914_p12 = scmp.lt.u32.totalorder %s907_s12, %s1588_s2 }
  0x1a   : > { %p909_p9 = pneg %p1229_p7 }
  0x1c   : > { %p910_p10 = pnand %p909_p9, %p908_p8 }
  0x1e   : > { %p911_p11 = pneg %p910_p10 }
  0x20   : > { %p916_p13 = pnand %p914_p12, %p911_p11 }
  0x22   : > { %919 = shalt.err (!%p916_p13)
}
  0x23   : > { %s920_s17 = scalar_lea.vmem %s218_s29, 256  ;;  %p928_p5 = scmp.lt.s32.totalorder %s218_s29, %s218_s29 }
  0x24   : > { %p921_p0 = scmp.ne.s32.totalorder %s218_s29, %s920_s17  ;;  %p929_p3 = scmp.lt.s32.totalorder %s920_s17, %s920_s17 }
  0x26   : > { %p923_p2 = pnand %p921_p0, %p909_p9  ;;  %p930_p1 = por %p929_p3, %p928_p5 }
  0x28   : > { %p924_p6 = pneg %p923_p2 }
  0x2a   : > { %p931_p4 = pnand %p930_p1, %p924_p6 }
  0x2c   : > { %934 = shalt.err (!%p931_p4)
}
  0x2d   : > { %s1128_s18 = smov 64   ;;  %s1129_s19 = smov 4  }
  0x2e   : > { %806 = dma.hbm_to_vmem [thread:$0]  (!%p1229_p7), %s1588_s2, 256, %s218_s29, [#allocation8], %s1128_s18, %s1128_s18, %s1129_s19  }
  0x2f   : > { %p43_p1 = scmp.ne.s32.totalorder %s1121_s26, %s1117_s25  ;;  %p1577_p3 = scmp.eq.s32.totalorder %s1125_s27, 0 }
  0x30   : > { %p49_p4 = scmp.ne.s32.totalorder %s1117_s25, %s1113_s24  ;;  %p1576_p5 = scmp.eq.s32.totalorder %s1214_s30, 1 }
  0x31   : > { %p1257_p8 = scmp.eq.s32.totalorder %s752_s9, 1  ;;  %p45_p9 = por %p1577_p3, %p43_p1 }
  0x32   : > { %p1590_p10 = scmp.eq.s32.totalorder %s1214_s30, 0  ;;  %p1271_p7 = por %p1576_p5, %p43_p1 }
  0x33   : > { %p1277_p12 = por %p1257_p8, %p49_p4  ;;  %p1575_p13 = scmp.lt.s32.totalorder %s1125_s27, 2 }
  0x34   : > { %p1265_p11 = por %p1590_p10, %p49_p4  ;;  %s237_s9 = sand.u32 1, %s1121_s26  }
  0x35   : > { %s1592_s29 = scalar_select %p1271_p7, 1, 0 }
  0x36   : > { %s1591_s8 = scalar_select %p1265_p11, 1, 0 }
  0x37   : > { %s1593_s12 = scalar_select %p1277_p12, 1, 0 }
  0x38   : > { %s756_s13 = sshll.u32 %s237_s9, 3  ;;  %s757_s14 = sshll.u32 %s1125_s27, 7 }
  0x39   : > { %s1594_s0 = sld [smem:[#allocation21_spill]]  ;;  %s241_s18 = scalar_lea.vmem [#allocation4], %s756_s13 }
  0x3a   : > { %s248_s19 = sshll.u32 %s241_s18, 4  ;;  %p1293_p0 = pnand %p1575_p13, %p45_p9  ;;  %s1289_s19 = int_to_ptr.vmem [resolvable:$true] %s248_s19 }
  0x3b   : > { %s238_s28 = scalar_lea.sflag [#allocation5], %s237_s9 }
  0x3c   : > { %p937_p6 = pneg %p1293_p0 }
  0x3f   : > { %s1287_s17 = scalar_lea.hbm %s1594_s0, %s757_s14  ;;  %s940_s15 = scalar_lea.hbm %s1594_s0, 256 }
  0x40   : > { %s935_s10 = scalar_lea.hbm %s1287_s17, 128  ;;  %p941_p9 = scmp.lt.u32.totalorder %s1287_s17, %s1594_s0 }
  0x41   : > { %p936_p2 = scmp.ne.s32.totalorder %s1287_s17, %s935_s10  ;;  %p942_p10 = scmp.lt.u32.totalorder %s940_s15, %s935_s10 }
  0x42   : > { %p944_p5 = scmp.lt.u32.totalorder %s935_s10, %s1287_s17 }
  0x43   : > { %p938_p1 = pnand %p937_p6, %p936_p2  ;;  %p943_p13 = por %p942_p10, %p941_p9 }
  0x45   : > { %p939_p4 = pneg %p938_p1  ;;  %p945_p3 = por %p944_p5, %p943_p13 }
  0x47   : > { %p946_p12 = pnand %p945_p3, %p939_p4 }
  0x49   : > { %949 = shalt.err (!%p946_p12)
}
  0x4a   : > { %s950_s9 = scalar_lea.vmem %s1289_s19, 128  ;;  %s1130_s13 = smov [#allocation4]  }
  0x4b   : > { %p951_p2 = scmp.ne.s32.totalorder %s1289_s19, %s950_s9  ;;  %s955_s14 = sshll.u32 %s1130_s13, 4  ;;  %s956_s14 = int_to_ptr.vmem [resolvable:$false] %s955_s14 }
  0x4c   : > { %s957_s16 = scalar_lea.vmem %s956_s14, 256  ;;  %p958_p11 = scmp.lt.s32.totalorder %s1289_s19, %s956_s14 }
  0x4d   : > { %p953_p1 = pnand %p951_p2, %p937_p6  ;;  %p959_p9 = scmp.lt.s32.totalorder %s957_s16, %s950_s9 }
  0x4f   : > { %p954_p7 = pneg %p953_p1  ;;  %p960_p10 = por %p959_p9, %p958_p11 }
  0x51   : > { %p961_p5 = pnand %p960_p10, %p954_p7 }
  0x53   : > { %964 = shalt.err (!%p961_p5)
}
  0x54   : > { %810 = dma.hbm_to_vmem [thread:$0]  (!%p1293_p0), %s1287_s17, 128, %s1289_s19, %s238_s28  }
  0x55   : > { %s1323_s10 = sadd.s32 1, %s1125_s27   ;;  %s59_s15 = ssub.s32 1, %s1125_s27 }
  0x56   : > { %s33_s20 = ssub.s32 %s1125_s27, %s1323_s10  ;;  %s60_s18 = ssub.s32 1, %s1323_s10 }
  0x57   : > { %p34_p3 = scmp.eq.s32.totalorder %s33_s20, 0  ;;  %s61_s9 = ssub.s32 %s59_s15, %s60_s18 }
  0x58   : > { %s64_s13 = sadd.s32 1, %s1109_s23  ;;  %s1596_s14 = sadd.s32 1, %s1121_s26 }
  0x59   : > { %s1333_s16 = scalar_select %p34_p3, %s1121_s26, %s1596_s14  }
  0x5a   : > { %p62_p11 = scmp.eq.s32.totalorder %s61_s9, 0  ;;  %p71_p7 = scmp.ne.s32.totalorder %s1109_s23, %s1105_s22 }
  0x5b   : > { %1597 = sst [smem:[#allocation19_spill]] %s1333_s16  ;;  %p77_p12 = scmp.ne.s32.totalorder %s1105_s22, %s1101_s21 }
  0x5c   : > { %s255_s17 = sand.u32 1, %s1125_s27   ;;  %p1599_p13 = scmp.eq.s32.totalorder %s1125_s27, 0 }
  0x5d   : > { %s1341_s19 = scalar_select %p62_p11, %s1109_s23, %s64_s13  }
  0x5e   : > { %p73_p0 = por %p71_p7, %p1599_p13  ;;  %p1600_p6 = scmp.eq.s32.totalorder %s1214_s30, 0 }
  0x5f   : > { %1598 = sst [smem:[#allocation20_spill]] %s1341_s19  ;;  %p1602_p2 = scmp.eq.s32.totalorder %s1214_s30, 1 }
  0x60   : > { %p1347_p4 = por %p77_p12, %p1600_p6  ;;  %p1359_p9 = por %p1257_p8, %p77_p12 }
  0x61   : > { %p1353_p1 = por %p1602_p2, %p71_p7  ;;  %s257_s9 = sand.u32 1, %s1109_s23  }
  0x62   : > { %s1604_s18 = scalar_select %p1359_p9, 1, 0 }
  0x63   : > { %s1603_s20 = scalar_select %p1353_p1, 1, 0 }
  0x64   : > { %s758_s13 = sshll.u32 %s257_s9, 3  ;;  %s759_s14 = sshll.u32 %s59_s15, 7 }
  0x65   : > { %s1367_s16 = scalar_lea.hbm %s1567_s1, %s759_s14  ;;  %s259_s26 = scalar_lea.vmem [#allocation7], %s758_s13 }
  0x66   : > { %s267_s19 = sshll.u32 %s259_s26, 4  ;;  %p1605_p10 = scmp.lt.s32.totalorder %s1125_s27, 2  ;;  %s1375_s19 = int_to_ptr.vmem [resolvable:$true] %s267_s19 }
  0x67   : > { %s256_s15 = scalar_lea.sflag [#allocation8], %s255_s17  ;;  %s965_s9 = scalar_lea.hbm %s1367_s16, 128 }
  0x68   : > { %p1371_p5 = pnand %p1605_p10, %p73_p0  ;;  %p966_p8 = scmp.ne.s32.totalorder %s1367_s16, %s965_s9 }
  0x69   : > { %s970_s26 = scalar_lea.hbm %s1567_s1, 256  ;;  %p971_p12 = scmp.lt.u32.totalorder %s1367_s16, %s1567_s1 }
  0x6a   : > { %p967_p3 = pneg %p1371_p5  ;;  %p972_p13 = scmp.lt.u32.totalorder %s970_s26, %s965_s9 }
  0x6b   : > { %p974_p6 = scmp.lt.u32.totalorder %s965_s9, %s1367_s16 }
  0x6c   : > { %p968_p11 = pnand %p967_p3, %p966_p8  ;;  %p973_p0 = por %p972_p13, %p971_p12 }
  0x6e   : > { %p969_p7 = pneg %p968_p11  ;;  %p975_p2 = por %p974_p6, %p973_p0 }
  0x70   : > { %p976_p10 = pnand %p975_p2, %p969_p7 }
  0x72   : > { %979 = shalt.err (!%p976_p10)
}
  0x73   : > { %s980_s17 = scalar_lea.vmem %s1375_s19, 128  ;;  %s1131_s0 = smov [#allocation7]  }
  0x74   : > { %p981_p8 = scmp.ne.s32.totalorder %s1375_s19, %s980_s17  ;;  %s985_s2 = sshll.u32 %s1131_s0, 4  ;;  %s986_s2 = int_to_ptr.vmem [resolvable:$false] %s985_s2 }
  0x75   : > { %s987_s13 = scalar_lea.vmem %s986_s2, 256  ;;  %p988_p1 = scmp.lt.s32.totalorder %s1375_s19, %s986_s2 }
  0x76   : > { %p983_p11 = pnand %p981_p8, %p967_p3  ;;  %p989_p12 = scmp.lt.s32.totalorder %s987_s13, %s980_s17 }
  0x78   : > { %p984_p9 = pneg %p983_p11  ;;  %p990_p13 = por %p989_p12, %p988_p1 }
  0x7a   : > { %p991_p0 = pnand %p990_p13, %p984_p9 }
  0x7c   : > { %994 = shalt.err (!%p991_p0)
}
  0x7d   : > { %813 = dma.hbm_to_vmem [thread:$0]  (!%p1371_p5), %s1367_s16, 128, %s1375_s19, %s256_s15  }
  0x7e   : > { %p1607_p7 = scmp.ne.s32.totalorder %s1586_s7, 0 }
  0x7f   : > { %s1405_s9 = sand.u32 (!%p1607_p7), 1, %s1117_s25   ;;  %p1608_p1 = scmp.ne.s32.totalorder (!%p1607_p7), %s1591_s8, 0 }
  0x80   : > { %276 = sbr.rel (%p1607_p7) target bundleno = 956 (0x3bc), region = 40  ;;  %s761_s26 = sshll.u32 (!%p1607_p7), %s1405_s9, 3 }
  0x81   : > { %s279_s14 = scalar_lea.sflag (!%p1607_p7), [#allocation5], %s1405_s9  ;;  %s282_s17 = scalar_lea.vmem (!%p1607_p7), [#allocation4], %s761_s26 }
  0x87   : > { %1080 = dma.done.wait (%p1608_p1), %s279_s14, 128  }
  0x88   : > { %1082 = vsyncadd (%p1608_p1), %s279_s14, 4294967168  ;;  %s287_s7 = sand.u32 1, %s1214_s30   ;;  %s1582_s16 = sand.u32 1, %s1105_s22  }
  0x89   : > { %s1417_s19 = sshll.u32 %s1582_s16, 3  ;;  %s288_s11 = scalar_lea.sflag [#allocation8], %s287_s7 }
  0x8a   : > { %s291_s15 = scalar_lea.vmem [#allocation7], %s1417_s19 }
  0x8b   : > { %1084 = dma.done.wait (%p1347_p4), %s288_s11, 128  }
  0x8c   : > { %1086 = vsyncadd (%p1347_p4), %s288_s11, 4294967168  ;;  %p1609_p9 = scmp.eq.s32.totalorder %s1214_s30, 0 }
  0x8e   : > { %1088 = dma.done.wait (%p1609_p9), [#allocation8], 256   ;;  %p1610_p5 = pmov %p1609_p9 }
  0x8f   : > { %s1428_s8 = scalar_lea.vmem [#allocation10], %s761_s26  ;;  %s333_s0 = scalar_lea.vmem [#allocation11], %s1417_s19 }
  0x90   : > { %1090 = vsyncadd (%p1610_p5), [#allocation8], 4294967040  ;;  %p1611_p3 = scmp.ne.s32.totalorder %s1214_s30, 0 }
  0x91   : > { %vm341_vm0 = vcmask (!%p1611_p3), 123904   ;;  %v1132_v0 = vmov (!%p1611_p3), 0.0  }
  0x92   : > { %340 = sbr.rel (%p1611_p3) target bundleno = 153 (0x99), region = 56  ;;  %342 = vst.msk [vmem:[#allocation2] sm:$0x3] (!%p1611_p3), %vm341_vm0, %v1132_v0  ;;  %343 = vst.msk [vmem:[#allocation3] sm:$0x3] (!%p1611_p3), %vm341_vm0, %v1132_v0 }
  0x99 PF: > { %v893_v1 = vld [vmem:[#allocation9] sm:$0xff]   ;;  %v1133_v2 = vmov 0.0   ;;  %v894_v3 = vld [vmem:[#allocation9 + $0x8] sm:$0xff]   ;;  %vm1134_vm1 = vmmov 0   ;;  %v1435_v5 = vld [vmem:[%s291_s15] sm:$0xff]  ;;  %vm350_vm2 = vcmask 1043456  }
  0x9a   : > { %783 = vmatprep.subr.bf16.mxu0 %v1133_v2  ;;  %787 = vmatprep.mubr.msk.bf16.mxu0 %vm1134_vm1, %v1133_v2  ;;  %v1433_v4 = vld [vmem:[%s282_s17] sm:$0xff]  ;;  %v347_v7 = vpack.c.bf16 %v1435_v5, %v1435_v5  ;;  %vm370_vm3 = vcmask 261120   ;;  %vm414_vm4 = vcmask 785408   ;;  %v770_v36 = vld [vmem:[%s1569_s3] ss:$0 sm:$0xff]  ;;  %s1135_s14 = smov 112  }
  0x9b   : > { %784 = vmatpush3.bf16.msra.mxu0 %v893_v1  ;;  %v346_v6 = vpack.c.bf16 %v1433_v4, %v1433_v4  ;;  %v771_v38 = vld [vmem:[%s1570_s4] ss:$0 sm:$0xff]  ;;  %v489_v46 = vld [vmem:[#allocation3] sm:$0x3]  ;;  %s1136_s17 = smov 48   ;;  %s1137_s7 = smov 96  }
  0x9c   : > { %785 = vmatprep.subr.bf16.mxu0 %v1133_v2  ;;  %v349_v8 = vrot.slane %v347_v7, 4  ;;  %v495_v49 = vrot.slane %v489_v46, 2  ;;  %s1138_s11 = smov 64   ;;  %v488_v57 = vld [vmem:[#allocation2] sm:$0x3]  ;;  %vm492_vm5 = vcmask 1041408  }
  0x9d   : > { %vm501_vm6 = vcmask 1045504   ;;  %vm537_vm7 = vcmask 130054   ;;  %s1139_s15 = smov 32   ;;  %s1140_s28 = smov 80   ;;  %vm564_vm8 = vcmask 130048   ;;  %vm543_vm9 = vcmask 123904  }
  0x9e   : > { %v353_v9 = vsel %vm350_vm2, %v346_v6, %v349_v8  ;;  %s776_s2 = sshll.u32 %s1214_s30, 7  ;;  %s604_s13 = sshll.u32 %s1428_s8, 4  ;;  %s1466_s13 = int_to_ptr.vmem [resolvable:$true] %s604_s13 }
  0x9f   : > { %786 = vmatpush3.bf16.msra.mxu0 %v894_v3  ;;  %s611_s26 = ssub.s32 1, %s1214_s30  ;;  %s586_s30 = scalar_lea.sflag [#allocation6], %s1405_s9 }
  0xa0   : > { %p1612_p6 = scmp.ne.s32.totalorder %s1592_s29, 0 }
  0xa2   : > { %788 = vmatmul.mubr.msk.bf16.vlgmr.msra.gmra.mrb[0].mxu0 %vm370_vm3, %v353_v9 }
 0x175   : > { %v407_v10 = vpop.f32.mrb[0].mxu0 }
 0x176   : > { %v789_v11 = vpop.f32.mrb[1].mxu0  ;;  %v415_v12 = vsel %vm414_vm4, %v407_v10, 0.0  ;;  %v424_v13 = vmul.f32 %v407_v10, %v407_v10 }
 0x177   : > { %416 = vadd.xlane.f32.xlu0 %v415_v12  ;;  %v410_v14 = vpop.f32.mrb[2].mxu0 }
 0x178   : > { %v790_v15 = vpop.f32.mrb[3].mxu0  ;;  %v426_v16 = vsel %vm414_vm4, %v424_v13, 0.0  ;;  %v425_v17 = vmul.f32 %v410_v14, %v410_v14  ;;  %v418_v18 = vsel %vm414_vm4, %v410_v14, 0.0 }
 0x179   : > { %427 = vadd.xlane.f32.xlu1 %v426_v16 }
 0x17a   : > { %v429_v19 = vsel %vm414_vm4, %v425_v17, 0.0 }
 0x17b   : > { %419 = vadd.xlane.f32.xlu0 %v418_v18 }
 0x17d   : > { %430 = vadd.xlane.f32.xlu1 %v429_v19 }
 0x204   : > { %v417_v20 = vpop.xlane.xlu0 %416 }
 0x205   : > { %v422_v21 = vmul.f32 0.010416667, %v417_v20 }
 0x206   : > { %v428_v22 = vpop.xlane.xlu1 %427 }
 0x207   : > { %v436_v23 = vmul.f32 %v422_v21, %v422_v21  ;;  %v432_v24 = vmul.f32 0.010416667, %v428_v22  ;;  %v434_v34 = vsub.f32 %v407_v10, %v422_v21 }
 0x208   : > { %v420_v25 = vpop.xlane.xlu0 %419 }
 0x209   : > { %v438_v26 = vsub.f32 %v432_v24, %v436_v23  ;;  %v423_v27 = vmul.f32 0.010416667, %v420_v25 }
 0x20a   : > { %v431_v28 = vpop.xlane.xlu1 %430 }
 0x20b   : > { %v440_v29 = vadd.f32 1e-05, %v438_v26  ;;  %v437_v30 = vmul.f32 %v423_v27, %v423_v27  ;;  %v433_v31 = vmul.f32 0.010416667, %v431_v28  ;;  %v435_v39 = vsub.f32 %v410_v14, %v423_v27 }
 0x20d   : > { %895 = vrsqrt.f32 %v440_v29  ;;  %v439_v32 = vsub.f32 %v433_v31, %v437_v30 }
 0x20f   : > { %v441_v33 = vadd.f32 1e-05, %v439_v32 }
 0x211   : > { %897 = vrsqrt.f32 %v441_v33 }
 0x217   : > { %v896_v35 = vpop.eup %895 }
 0x218   : > { %v444_v37 = vmul.f32 %v896_v35, %v434_v34 }
 0x21a   : > { %v453_v40 = vmul.f32 %v770_v36, %v444_v37 }
 0x21b   : > { %v898_v41 = vpop.eup %897 }
 0x21c   : > { %v462_v42 = vadd.f32 %v771_v38, %v453_v40  ;;  %v445_v43 = vmul.f32 %v898_v41, %v435_v39 }
 0x21e   : > { %v772_v44 = vmul.f32 -1.442695, %v462_v42  ;;  %472 = vrot.lane.b32.xlu0 %v462_v42, %s1135_s14  ;;  %v454_v45 = vmul.f32 %v770_v36, %v445_v43 }
 0x220   : > { %899 = vpow2.f32 %v772_v44  ;;  %v463_v47 = vadd.f32 %v771_v38, %v454_v45 }
 0x222   : > { %484 = vrot.lane.b32.xlu1 %v463_v47, %s1135_s14  ;;  %v773_v48 = vmul.f32 -1.442695, %v463_v47 }
 0x224   : > { %901 = vpow2.f32 %v773_v48 }
 0x226   : > { %496 = vrot.lane.b32.xlu1 %v495_v49, %s1136_s17 }
 0x22a   : > { %v900_v50 = vpop.eup %899 }
 0x22b   : > { %v467_v51 = vadd.f32 1.0, %v900_v50 }
 0x22d   : > { %903 = vrcp.f32 %v467_v51 }
 0x22e   : > { %v902_v52 = vpop.eup %901 }
 0x22f   : > { %v479_v53 = vadd.f32 1.0, %v902_v52 }
 0x231   : > { %905 = vrcp.f32 %v479_v53 }
 0x237   : > { %v904_v54 = vpop.eup %903 }
 0x238   : > { %551 = vrot.lane.b32.xlu1 %v904_v54, %s1137_s7  ;;  %v470_v56 = vsub.f32 1.0, %v904_v54 }
 0x23a   : > { %v490_v59 = vmul.f32 %v488_v57, %v470_v56  ;;  %v510_v2 = vrot.slane %v470_v56, 6 }
 0x23b   : > { %v906_v55 = vpop.eup %905 }
 0x23c   : > { %571 = vrot.lane.b32.xlu0 %v906_v55, %s1138_s11  ;;  %v482_v1 = vsub.f32 1.0, %v906_v55  ;;  %v512_v12 = vsel %vm492_vm5, 1.0, %v510_v2 }
 0x23d   : > { %v513_v15 = vmul.f32 %v512_v12, %v470_v56 }
 0x23e   : > { %v527_v18 = vrot.slane %v482_v1, 2 }
 0x240   : > { %v529_v24 = vsel %vm501_vm6, %v527_v18, 1.0 }
 0x241   : > { %v530_v26 = vmul.f32 %v529_v24, %v482_v1 }
 0x290   : > { %v473_v58 = vpop.permute.xlu0 %472 }
 0x291   : > { %v475_v60 = vmul.f32 %v904_v54, %v473_v58 }
 0x293   : > { %v491_v61 = vadd.f32 %v490_v59, %v475_v60 }
 0x294   : > { %v485_v62 = vpop.permute.xlu1 %484 }
 0x295   : > { %v493_v63 = vsel %vm492_vm5, %v491_v61, %v475_v60  ;;  %v487_v7 = vmul.f32 %v906_v55, %v485_v62 }
 0x296   : > { %v504_v0 = vrot.slane %v493_v63, 6 }
 0x298   : > { %v506_v3 = vsel %vm492_vm5, 0.0, %v504_v0  ;;  %v497_v6 = vpop.permute.xlu1 %496 }
 0x299   : > { %v499_v8 = vmul.f32 %v497_v6, %v482_v1  ;;  %v507_v9 = vmul.f32 %v506_v3, %v470_v56 }
 0x29b   : > { %v500_v10 = vadd.f32 %v499_v8, %v487_v7  ;;  %v508_v11 = vadd.f32 %v507_v9, %v493_v63 }
 0x29d   : > { %v515_v13 = vrot.slane %v508_v11, 4  ;;  %v502_v14 = vsel %vm501_vm6, %v487_v7, %v500_v10 }
 0x29e   : > { %v521_v16 = vrot.slane %v502_v14, 2 }
 0x29f   : > { %v517_v17 = vsel %vm350_vm2, 0.0, %v515_v13 }
 0x2a0   : > { %v518_v19 = vmul.f32 %v517_v17, %v513_v15  ;;  %v523_v20 = vsel %vm501_vm6, %v521_v16, 0.0 }
 0x2a1   : > { %v524_v21 = vmul.f32 %v523_v20, %v482_v1 }
 0x2a2   : > { %v519_v22 = vadd.f32 %v518_v19, %v508_v11 }
 0x2a3   : > { %v525_v23 = vadd.f32 %v524_v21, %v502_v14 }
 0x2a4   : > { %546 = vrot.lane.b32.xlu1 %v519_v22, %s1139_s15  ;;  %538 = vst.msk [vmem:[#allocation2 - $0x6] sm:$0xc0] %vm537_vm7, %v519_v22 }
 0x2a5   : > { %v532_v25 = vrot.slane %v525_v23, 4 }
 0x2a7   : > { %v534_v27 = vsel %vm350_vm2, %v532_v25, 0.0 }
 0x2a8   : > { %v535_v28 = vmul.f32 %v534_v27, %v530_v26 }
 0x2aa   : > { %v552_v29 = vpop.permute.xlu1 %551  ;;  %v536_v30 = vadd.f32 %v535_v28, %v525_v23 }
 0x2ab   : > { %v554_v31 = vmul.f32 %v552_v29, %v1433_v4 }
 0x2ac   : > { %566 = vrot.lane.b32.xlu0 %v536_v30, %s1139_s15 }
 0x2ad   : > { %556 = vrot.lane.b32.xlu1 %v554_v31, %s1139_s15  ;;  %s1464_s15 = scalar_lea.hbm %s1571_s5, %s776_s2  ;;  %s1141_s2 = smov [#allocation10]  }
 0x2ae   : > { %v572_v32 = vpop.permute.xlu0 %571  ;;  %s999_s14 = sshll.u32 %s1141_s2, 4  ;;  %s1000_s14 = int_to_ptr.vmem [resolvable:$false] %s999_s14 }
 0x2af   : > { %v574_v33 = vmul.f32 %v572_v32, %v1435_v5  ;;  %p1002_p8 = scmp.lt.s32.totalorder %s1466_s13, %s1000_s14 }
 0x2b1   : > { %576 = vrot.lane.b32.xlu0 %v574_v33, %s1138_s11  ;;  %s1001_s11 = scalar_lea.vmem %s1000_s14, 256 }
 0x316   : > { %v547_v34 = vpop.permute.xlu1 %546 }
 0x317   : > { %v549_v35 = vmul.f32 %v547_v34, %v470_v56 }
 0x31e   : > { %v567_v36 = vpop.permute.xlu0 %566 }
 0x31f   : > { %v557_v37 = vpop.permute.xlu1 %556  ;;  %v569_v39 = vmul.f32 %v567_v36, %v482_v1 }
 0x320   : > { %v559_v38 = vadd.f32 %v557_v37, %v549_v35 }
 0x322   : > { %561 = vrot.lane.b32.xlu1 %v559_v38, %s1137_s7  ;;  %s1468_s7 = sshll.u32 %s611_s26, 7 }
 0x323   : > { %v577_v4 = vpop.permute.xlu0 %576 }
 0x324   : > { %v579_v40 = vadd.f32 %v577_v4, %v569_v39 }
 0x326   : > { %540 = vrot.lane.b32.xlu1 %v536_v30, %s1140_s28  ;;  %581 = vrot.lane.b32.xlu0 %v579_v40, %s1136_s17  ;;  %s1472_s28 = sshll.u32 %s333_s0, 4  ;;  %s995_s17 = scalar_lea.vmem %s1466_s13, 128  ;;  %s1505_s28 = int_to_ptr.vmem [resolvable:$true] %s1472_s28 }
 0x327   : > { %p996_p4 = scmp.ne.s32.totalorder %s1466_s13, %s995_s17  ;;  %p1003_p11 = scmp.lt.s32.totalorder %s1001_s11, %s995_s17 }
 0x329   : > { %p997_p2 = pnand %p996_p4, %p1612_p6  ;;  %p1004_p12 = por %p1003_p11, %p1002_p8 }
 0x32b   : > { %p998_p10 = pneg %p997_p2 }
 0x32d   : > { %p1005_p13 = pnand %p1004_p12, %p998_p10 }
 0x394   : > { %v562_v5 = vpop.permute.xlu1 %561 }
 0x395   : > { %565 = vst.msk [vmem:[%s1428_s8] sm:$0xff] %vm564_vm8, %v562_v5 }
 0x396   : > { %1008 = shalt.err (!%p1005_p13)
}
 0x397   : > { %s1009_s9 = scalar_lea.hbm %s1464_s15, 128  ;;  %s1013_s2 = scalar_lea.hbm %s1571_s5, 256 }
 0x398   : > { %p1010_p0 = scmp.ne.s32.totalorder %s1464_s15, %s1009_s9  ;;  %p1014_p9 = scmp.lt.u32.totalorder %s1464_s15, %s1571_s5 }
 0x399   : > { %p1015_p5 = scmp.lt.u32.totalorder %s1013_s2, %s1009_s9  ;;  %p1017_p4 = scmp.lt.u32.totalorder %s1009_s9, %s1464_s15 }
 0x39a   : > { %p1011_p7 = pnand %p1010_p0, %p1612_p6 }
 0x39b   : > { %p1016_p3 = por %p1015_p5, %p1014_p9 }
 0x39c   : > { %p1012_p1 = pneg %p1011_p7 }
 0x39d   : > { %p1018_p2 = por %p1017_p4, %p1016_p3 }
 0x39f   : > { %p1019_p10 = pnand %p1018_p2, %p1012_p1 }
 0x3a1   : > { %1022 = shalt.err (!%p1019_p10)
}
 0x3a2   : > { %799 = dma.vmem_to_hbm [thread:$0]  (%p1612_p6), %s1466_s13, 128, %s1464_s15, %s586_s30   ;;  %v541_v41 = vpop.permute.xlu1 %540  ;;  %v582_v42 = vpop.permute.xlu0 %581 }
 0x3a3   : > { %s1502_s16 = scalar_lea.hbm %s1572_s6, %s1468_s7  ;;  %544 = vst.msk [vmem:[#allocation3] sm:$0x3] %vm543_vm9, %v541_v41  ;;  %s1613_s29 = sand.u32 1, %s1105_s22  }
 0x3a4   : > { %584 = vst.msk [vmem:[%s333_s0] sm:$0xff] %vm564_vm8, %v582_v42  ;;  %s591_s9 = scalar_lea.sflag [#allocation12], %s1613_s29  ;;  %s1023_s13 = scalar_lea.vmem %s1505_s28, 128 }
 0x3a5   : > { %p1024_p6 = scmp.ne.s32.totalorder %s1505_s28, %s1023_s13  ;;  %p1614_p8 = scmp.ne.s32.totalorder %s1603_s20, 0 }
 0x3a6   : > { %s1142_s15 = smov [#allocation11]  }
 0x3a7   : > { %p1025_p11 = pnand %p1024_p6, %p1614_p8  ;;  %s1027_s7 = sshll.u32 %s1142_s15, 4  ;;  %s1028_s7 = int_to_ptr.vmem [resolvable:$false] %s1027_s7 }
 0x3a8   : > { %s1029_s30 = scalar_lea.vmem %s1028_s7, 256  ;;  %p1030_p13 = scmp.lt.s32.totalorder %s1505_s28, %s1028_s7 }
 0x3a9   : > { %p1026_p12 = pneg %p1025_p11  ;;  %p1031_p0 = scmp.lt.s32.totalorder %s1029_s30, %s1023_s13 }
 0x3ab   : > { %p1032_p7 = por %p1031_p0, %p1030_p13 }
 0x3ad   : > { %p1033_p1 = pnand %p1032_p7, %p1026_p12 }
 0x3af   : > { %1036 = shalt.err (!%p1033_p1)
}
 0x3b0   : > { %s1037_s19 = scalar_lea.hbm %s1502_s16, 128  ;;  %s1041_s26 = scalar_lea.hbm %s1572_s6, 256 }
 0x3b1   : > { %p1038_p9 = scmp.ne.s32.totalorder %s1502_s16, %s1037_s19  ;;  %p1042_p4 = scmp.lt.u32.totalorder %s1502_s16, %s1572_s6 }
 0x3b2   : > { %p1043_p2 = scmp.lt.u32.totalorder %s1041_s26, %s1037_s19  ;;  %p1045_p6 = scmp.lt.u32.totalorder %s1037_s19, %s1502_s16 }
 0x3b3   : > { %p1039_p5 = pnand %p1038_p9, %p1614_p8 }
 0x3b4   : > { %p1044_p10 = por %p1043_p2, %p1042_p4 }
 0x3b5   : > { %p1040_p3 = pneg %p1039_p5 }
 0x3b6   : > { %p1046_p11 = por %p1045_p6, %p1044_p10 }
 0x3b8   : > { %p1047_p12 = pnand %p1046_p11, %p1040_p3 }
 0x3ba   : > { %1050 = shalt.err (!%p1047_p12)
}
 0x3bb   : > { %800 = dma.vmem_to_hbm [thread:$0]  (%p1614_p8), %s1505_s28, 128, %s1502_s16, %s591_s9  }
 0x3bc PF: > { %s630_s17 = sand.u32 1, %s1113_s24   ;;  %p1615_p13 = scmp.ne.s32.totalorder %s1593_s12, 0 }
 0x3bd   : > { %p1616_p0 = scmp.ge.s32.totalorder %s1125_s27, 2  ;;  %s631_s11 = scalar_lea.sflag [#allocation6], %s630_s17 }
 0x3bf   : > { %p815_p7 = pnand %p1616_p0, %p1615_p13 }
 0x3c1   : > { %1092 = dma.done.wait (!%p815_p7), %s631_s11, 128  }
 0x3c2   : > { %1094 = vsyncadd (!%p815_p7), %s631_s11, 4294967168  ;;  %s639_s29 = sand.u32 1, %s1101_s21   ;;  %p1617_p1 = scmp.ne.s32.totalorder %s1604_s18, 0 }
 0x3c3   : > { %p1618_p9 = pmov %p1616_p0  ;;  %s640_s20 = scalar_lea.sflag [#allocation12], %s639_s29 }
 0x3c5   : > { %p818_p5 = pnand %p1618_p9, %p1617_p1 }
 0x3c7   : > { %1096 = dma.done.wait (!%p818_p5), %s640_s20, 128  }
 0x3c8   : > { %1098 = vsyncadd (!%p818_p5), %s640_s20, 4294967168  ;;  %s1619_s24 = sld [smem:[#allocation20_spill]]  ;;  %s1620_s12 = sld [smem:[#allocation18_spill]] }
 0x3c9   : > { %s1621_s26 = sld [smem:[#allocation19_spill]]  ;;  %p26_p8 = scmp.ge.s32.totalorder %s1323_s10, 4  }
 0x3ca   : > { %s1622_s21 = smov %s1105_s22  ;;  %s1623_s22 = smov %s1109_s23 }
 0x3cb   : > { %s1627_s27 = smov %s1323_s10  ;;  %28 = sbr.rel (!%p26_p8) target bundleno = 14 (0xe), region = 123 }
 0x3ce   : > { %s1624_s23 = smov %s1619_s24  ;;  %s1625_s24 = smov %s1117_s25 }
 0x3cf   : > { %s1626_s25 = smov %s1620_s12 }
 0x3d2   :  { %645 = vsyncpa [#allocation5], 1 }
 0x3d3   :  { %647 = vsyncpa [#allocation5 + $0x1], 1 }
 0x3d4   :  { %648 = vsyncpa [#allocation8], 1 }
 0x3d5   :  { %650 = vsyncpa [#allocation8 + $0x1], 1 }
 0x3d6   :  { %651 = vsyncpa [#allocation6], 1 }
 0x3d7   :  { %653 = vsyncpa [#allocation6 + $0x1], 1 }
 0x3d8   :  { %654 = vsyncpa [#allocation12], 1 }
 0x3d9   :  { %656 = vsyncpa [#allocation12 + $0x1], 1 }

</bundles_post_ra>
